<compile_context>
chip_gen: v5e
topology: v5e:2x2
jax: 0.10.0
libtpu: 0.0.40
codegen_flags: <defaults>
</compile_context>

<pallas_src>
import jax
import jax.numpy as jnp
from jax.experimental import pallas as pl
from jax.experimental.pallas import tpu as pltpu


def _round_up(n: int, m: int) -> int:
    return ((n + m - 1) // m) * m


def _cdiv(a: int, b: int) -> int:
    return -(-a // b)


def _vmem_capacity_bytes() -> int:
    """Physical VMEM per TensorCore (64 MiB on v7x, 128 MiB on v5e/v6e)."""
    try:
        return int(pltpu.get_tpu_info().vmem_capacity_bytes)
    except Exception:
        return 128 << 20  # conservative default (v5e/v6e)


def _spec(shape, index_map, *, min_buffer=False):
    """BlockSpec; grid-invariant operands get a single pipeline buffer."""
    if min_buffer and hasattr(pl, "Buffered"):
        try:
            return pl.BlockSpec(shape, index_map, pipeline_mode=pl.Buffered(1))
        except TypeError:  # older API without pipeline_mode kwarg
            pass
    return pl.BlockSpec(shape, index_map)


# --------------------------------------------------------------------------- #
# Kernels
# --------------------------------------------------------------------------- #
def _two_layer_kernel_fused(x_ref, w1_ref, b1_ref, w2_ref, b2_ref, out_ref):
    """n_k == 1 fast path: no accumulator scratch / zero-init round trip."""
    h = jnp.dot(x_ref[...], w1_ref[...], preferred_element_type=jnp.float32)
    h = jnp.maximum(h + b1_ref[...], 0.0)                     # bias + ReLU (f32)
    o = jnp.dot(h.astype(w2_ref.dtype), w2_ref[...],
                preferred_element_type=jnp.float32)
    out_ref[...] = jax.nn.sigmoid(o + b2_ref[...]).astype(out_ref.dtype)


def _two_layer_kernel_ktiled(x_ref, w1_ref, b1_ref, w2_ref, b2_ref, out_ref,
                             acc_ref):
    """Grid (n_b, n_k): K-tiled layer 1 with f32 VMEM accumulator."""
    k = pl.program_id(1)

    @pl.when(k == 0)
    def _():
        acc_ref[...] = jnp.zeros_like(acc_ref)

    acc_ref[...] += jnp.dot(x_ref[...], w1_ref[...],
                            preferred_element_type=jnp.float32)

    @pl.when(k == pl.num_programs(1) - 1)
    def _():
        h = jnp.maximum(acc_ref[...] + b1_ref[...], 0.0)       # (TB, H_p) f32
        o = jnp.dot(h.astype(w2_ref.dtype), w2_ref[...],
                    preferred_element_type=jnp.float32)
        out_ref[...] = jax.nn.sigmoid(o + b2_ref[...]).astype(out_ref.dtype)


# --------------------------------------------------------------------------- #
# Wrappers
# --------------------------------------------------------------------------- #
def prepare_params(w1, b1, w2, b2, *, compute_dtype=jnp.bfloat16, block_k=512,
                   vmem_cap=None):
    """Pad / cast the (static) parameters once; decide W1 tiling / residency.

    w1: (D_in, H), b1: (H,), w2: (H, D_out), b2: (D_out,).
    """
    assert block_k % 128 == 0
    if vmem_cap is None:
        vmem_cap = _vmem_capacity_bytes()

    D_in, H = w1.shape
    D_out = w2.shape[1]
    wdt = compute_dtype if compute_dtype is not None else w1.dtype
    wsz = jnp.dtype(wdt).itemsize

    D_in_p = _round_up(D_in, 128)
    H_p = _round_up(H, 128)
    D_out_p = _round_up(D_out, 128)
    # TODO(synk): for very large H, additionally tile the H axis of layer 2
    # (second accumulator); not needed at these sizes.

    # W1 residency: keep the whole (padded) W1 in VMEM when it fits a
    # generation-specific budget (~24 MiB @128 MiB VMEM, ~12 MiB @64 MiB).
    resident_budget = (3 * vmem_cap) // 16
    w1_bytes = D_in_p * H_p * wsz
    if D_in_p <= block_k or w1_bytes <= resident_budget:
        tk = D_in_p                      # single K block -> resident W1
    else:
        tk = block_k                     # K-tiled, W1 re-streamed per batch tile
        D_in_p = _round_up(D_in, tk)
    n_k = D_in_p // tk

    w1p = jnp.zeros((D_in_p, H_p), wdt).at[:D_in, :H].set(w1.astype(wdt))
    w2p = jnp.zeros((H_p, D_out_p), wdt).at[:H, :D_out].set(w2.astype(wdt))
    # Biases stay f32 (accumulation / epilogue dtype), shaped as (1, N) rows.
    b1p = jnp.zeros((1, H_p), jnp.float32).at[0, :H].set(b1.astype(jnp.float32))
    b2p = jnp.zeros((1, D_out_p), jnp.float32).at[0, :D_out].set(
        b2.astype(jnp.float32))

    return dict(w1=w1p, b1=b1p, w2=w2p, b2=b2p,
                D_in=D_in, H=H, D_out=D_out,
                D_in_p=D_in_p, H_p=H_p, D_out_p=D_out_p,
                tk=tk, n_k=n_k,
                compute_dtype=wdt, vmem_cap=int(vmem_cap))


def two_layer_net_prepared(x, params, *, block_b=None):
    """sigmoid(relu(x @ W1 + b1) @ W2 + b2) with pre-padded params."""
    B, D_in = x.shape
    assert D_in == params["D_in"]
    out_dtype = x.dtype

    cdt = params["compute_dtype"]
    D_in_p, H_p, D_out_p = params["D_in_p"], params["H_p"], params["D_out_p"]
    tk, n_k = params["tk"], params["n_k"]
    D_out = params["D_out"]
    vmem_cap = params["vmem_cap"]

    x_isz = jnp.dtype(cdt).itemsize
    wsz = jnp.dtype(cdt).itemsize
    out_isz = jnp.dtype(out_dtype).itemsize

    # bf16 packs two rows per sublane -> align batch to 16 when bf16 is involved.
    align_b = 16 if (x_isz <= 2 or out_isz <= 2) else 8

    # Generation-aware default batch tile.
    if block_b is None:
        if vmem_cap <= (64 << 20):
            block_b = 256            # v7x-class: 64 MiB VMEM/TC
        elif x_isz <= 2:
            block_b = 1024           # bf16 on v5e/v6e: keep the W1 stream hidden
        else:
            block_b = 512
    assert block_b % align_b == 0

    # Balanced batch tiles (bounds padding waste to one sublane group).
    n_tiles = max(1, _cdiv(B, block_b))
    tb = _round_up(_cdiv(B, n_tiles), align_b)
    B_p = _round_up(B, tb)
    n_b = B_p // tb

    # v7x (2 TCs): keep >=2 steps on the "parallel" axis so both cores work.
    if vmem_cap <= (64 << 20) and n_b == 1 and tb >= 2 * align_b:
        tb = _round_up(tb // 2, align_b)
        B_p = _round_up(B, tb)
        n_b = B_p // tb

    # Pad / cast x only when needed (skip entirely for aligned shapes & dtype).
    xc = x.astype(cdt) if x.dtype != cdt else x
    if (B_p, D_in_p) != (B, D_in):
        xp = jnp.zeros((B_p, D_in_p), cdt).at[:B, :D_in].set(xc)
    else:
        xp = xc

    # ---- VMEM budget ----
    if n_k == 1:
        vmem_est = (2 * tb * tk * x_isz                 # x tiles (double-buffered)
                    + D_in_p * H_p * wsz                # W1 resident, 1 buffer
                    + H_p * D_out_p * wsz               # W2 resident, 1 buffer
                    + (H_p + D_out_p) * 4               # biases, 1 buffer each
                    + 2 * tb * D_out_p * out_isz        # out tiles
                    + tb * H_p * 4)                     # f32 hidden value headroom
    else:
        vmem_est = (2 * tb * tk * x_isz
                    + 2 * tk * H_p * wsz                # streamed W1 K-tiles
                    + H_p * D_out_p * wsz
                    + (H_p + D_out_p) * 4
                    + 2 * tb * D_out_p * out_isz
                    + tb * H_p * 4)                     # f32 accumulator scratch

    # ~52 MiB on v7x (64 MiB physical), ~104 MiB on v5e/v6e (128 MiB physical).
    hard_cap = (13 * vmem_cap) // 16
    vmem_limit = int(min(max(int(vmem_est * 1.25), min(32 << 20, hard_cap)),
                         hard_cap))

    cost = pl.CostEstimate(
        flops=2 * B_p * (D_in_p * H_p + H_p * D_out_p),
        transcendentals=B_p * D_out_p,
        bytes_accessed=(B_p * D_in_p * x_isz
                        + D_in_p * H_p * wsz * (n_b if n_k > 1 else 1)
                        + H_p * D_out_p * wsz
                        + (H_p + D_out_p) * 4
                        + B_p * D_out_p * out_isz),
    )

    def _call(min_buffer):
        if n_k == 1:
            grid = (n_b,)
            in_specs = [
                pl.BlockSpec((tb, tk), lambda i: (i, 0)),                     # x
                _spec((tk, H_p), lambda i: (0, 0), min_buffer=min_buffer),    # W1
                _spec((1, H_p), lambda i: (0, 0), min_buffer=min_buffer),     # b1
                _spec((H_p, D_out_p), lambda i: (0, 0), min_buffer=min_buffer),  # W2
                _spec((1, D_out_p), lambda i: (0, 0), min_buffer=min_buffer),    # b2
            ]
            out_spec = pl.BlockSpec((tb, D_out_p), lambda i: (i, 0))
            scratch = []
            sem = ("parallel",)
            kernel = _two_layer_kernel_fused
        else:
            grid = (n_b, n_k)
            in_specs = [
                pl.BlockSpec((tb, tk), lambda i, k: (i, k)),                  # x
                pl.BlockSpec((tk, H_p), lambda i, k: (k, 0)),                 # W1
                _spec((1, H_p), lambda i, k: (0, 0), min_buffer=min_buffer),  # b1
                _spec((H_p, D_out_p), lambda i, k: (0, 0),
                      min_buffer=min_buffer),                                 # W2
                _spec((1, D_out_p), lambda i, k: (0, 0),
                      min_buffer=min_buffer),                                 # b2
            ]
            out_spec = pl.BlockSpec((tb, D_out_p), lambda i, k: (i, 0))
            scratch = [pltpu.VMEM((tb, H_p), jnp.float32)]
            sem = ("parallel", "arbitrary")
            kernel = _two_layer_kernel_ktiled

        return pl.pallas_call(
            kernel,
            out_shape=jax.ShapeDtypeStruct((B_p, D_out_p), out_dtype),
            grid_spec=pltpu.PrefetchScalarGridSpec(
                num_scalar_prefetch=0,
                grid=grid,
                in_specs=in_specs,
                out_specs=out_spec,
                scratch_shapes=scratch,
            ),
            compiler_params=pltpu.CompilerParams(
                dimension_semantics=sem,
                vmem_limit_bytes=vmem_limit,
            ),
            cost_estimate=cost,
        )(xp, params["w1"], params["b1"], params["w2"], params["b2"])

    try:
        out_p = _call(min_buffer=True)
    except Exception:
        # Safety net: fall back to default (double) buffering on resident operands.
        out_p = _call(min_buffer=False)

    if (B_p, D_out_p) != (B, D_out):
        return out_p[:B, :D_out]
    return out_p


def two_layer_net(x, w1, b1, w2, b2, *, compute_dtype=jnp.bfloat16,
                  block_b=None, block_k=512):
    """Convenience wrapper (pads params per call; prefer prepare_params +
    two_layer_net_prepared when parameters are reused across calls)."""
    params = prepare_params(w1, b1, w2, b2, compute_dtype=compute_dtype,
                            block_k=block_k)
    return two_layer_net_prepared(x, params, block_b=block_b)


def init_params(key, D_in, H, D_out, dtype=jnp.float32):
    """Mimics torch.nn.Linear default init: U[-1/sqrt(fan_in), +1/sqrt(fan_in)].
    Weights stored pre-transposed as (D_in, H) and (H, D_out)."""
    k1, k2, k3, k4 = jax.random.split(key, 4)
    bound1 = 1.0 / jnp.sqrt(D_in)
    bound2 = 1.0 / jnp.sqrt(H)
    w1 = jax.random.uniform(k1, (D_in, H), dtype, -bound1, bound1)
    b1 = jax.random.uniform(k2, (H,), dtype, -bound1, bound1)
    w2 = jax.random.uniform(k3, (H, D_out), dtype, -bound2, bound2)
    b2 = jax.random.uniform(k4, (D_out,), dtype, -bound2, bound2)
    return w1, b1, w2, b2


if __name__ == "__main__":
    key = jax.random.PRNGKey(0)
    kx, kp = jax.random.split(key)

    B, D_in, H, D_out = 8, 16, 32, 8
    x = jax.random.normal(kx, (B, D_in), jnp.float32)
    w1, b1, w2, b2 = init_params(kp, D_in, H, D_out)

    # Pure-JAX reference.
    ref = jax.nn.sigmoid(jnp.maximum(x @ w1 + b1, 0.0) @ w2 + b2)

    # f32 MXU path -> tight tolerance.
    out_f32 = jax.block_until_ready(
        two_layer_net(x, w1, b1, w2, b2, compute_dtype=jnp.float32))
    assert out_f32.shape == (B, D_out)
    assert jnp.allclose(out_f32, ref, atol=1e-5, rtol=1e-5)

    # Default bf16 MXU operands (f32 accumulation / epilogue) -> looser tolerance.
    params = prepare_params(w1, b1, w2, b2)          # pad / cast weights once
    out_bf16 = jax.block_until_ready(two_layer_net_prepared(x, params))
    assert out_bf16.shape == (B, D_out)
    assert jnp.allclose(out_bf16, ref, atol=2e-2, rtol=2e-2)

    print("KERNEL_OK")
</pallas_src>

<mosaic_0001>
module attributes {stable_mosaic.version = 11 : i64} {
  func.func @_two_layer_kernel_fused(%arg0: i32, %arg1: memref<8x128xf32, #tpu.memory_space<vmem>>, %arg2: memref<128x128xf32, #tpu.memory_space<vmem>>, %arg3: memref<1x128xf32, #tpu.memory_space<vmem>>, %arg4: memref<128x128xf32, #tpu.memory_space<vmem>>, %arg5: memref<1x128xf32, #tpu.memory_space<vmem>>, %arg6: memref<8x128xf32, #tpu.memory_space<vmem>>) attributes {dimension_semantics = [#tpu.dimension_semantics<parallel>], iteration_bounds = array<i64: 1>, scalar_prefetch = 0 : i64, scratch_operands = 0 : i64, tpu.core_type = #tpu.core_type<tc>, window_params = [{transform_indices = @transform_0, window_bounds = array<i64: 8, 128>}, {pipeline_mode = #tpu.pipeline_mode<synchronous>, transform_indices = @transform_1, window_bounds = array<i64: 128, 128>}, {pipeline_mode = #tpu.pipeline_mode<synchronous>, transform_indices = @transform_2, window_bounds = array<i64: 1, 128>}, {pipeline_mode = #tpu.pipeline_mode<synchronous>, transform_indices = @transform_3, window_bounds = array<i64: 128, 128>}, {pipeline_mode = #tpu.pipeline_mode<synchronous>, transform_indices = @transform_4, window_bounds = array<i64: 1, 128>}, {transform_indices = @transform_5, window_bounds = array<i64: 8, 128>}]} {
    %c0 = arith.constant 0 : index
    %c0_0 = arith.constant 0 : index
    %0 = vector.load %arg1[%c0, %c0_0] : memref<8x128xf32, #tpu.memory_space<vmem>>, vector<8x128xf32>
    %c0_1 = arith.constant 0 : index
    %c0_2 = arith.constant 0 : index
    %1 = vector.load %arg2[%c0_1, %c0_2] : memref<128x128xf32, #tpu.memory_space<vmem>>, vector<128x128xf32>
    %cst = arith.constant dense<0.000000e+00> : vector<8x128xf32>
    %2 = tpu.matmul %0, %1, %cst {dimension_numbers = #tpu.dot_dimension_numbers<[1], [0], [0], [1], [0, 0, 1, 1], [], []>} : vector<8x128xf32>, vector<128x128xf32>, vector<8x128xf32> -> vector<8x128xf32>
    %c0_3 = arith.constant 0 : index
    %c0_4 = arith.constant 0 : index
    %3 = vector.load %arg3[%c0_3, %c0_4] : memref<1x128xf32, #tpu.memory_space<vmem>>, vector<1x128xf32>
    %4 = vector.broadcast %3 : vector<1x128xf32> to vector<8x128xf32>
    %5 = arith.addf %2, %4 : vector<8x128xf32>
    %cst_5 = arith.constant 0.000000e+00 : f32
    %6 = vector.broadcast %cst_5 : f32 to vector<8x128xf32>
    %7 = arith.maximumf %5, %6 : vector<8x128xf32>
    %c0_6 = arith.constant 0 : index
    %c0_7 = arith.constant 0 : index
    %8 = vector.load %arg4[%c0_6, %c0_7] : memref<128x128xf32, #tpu.memory_space<vmem>>, vector<128x128xf32>
    %cst_8 = arith.constant dense<0.000000e+00> : vector<8x128xf32>
    %9 = tpu.matmul %7, %8, %cst_8 {dimension_numbers = #tpu.dot_dimension_numbers<[1], [0], [0], [1], [0, 0, 1, 1], [], []>} : vector<8x128xf32>, vector<128x128xf32>, vector<8x128xf32> -> vector<8x128xf32>
    %c0_9 = arith.constant 0 : index
    %c0_10 = arith.constant 0 : index
    %10 = vector.load %arg5[%c0_9, %c0_10] : memref<1x128xf32, #tpu.memory_space<vmem>>, vector<1x128xf32>
    %11 = vector.broadcast %10 : vector<1x128xf32> to vector<8x128xf32>
    %12 = arith.addf %9, %11 : vector<8x128xf32>
    %13 = arith.negf %12 : vector<8x128xf32>
    %14 = math.exp %13 : vector<8x128xf32>
    %cst_11 = arith.constant 1.000000e+00 : f32
    %15 = vector.broadcast %cst_11 : f32 to vector<8x128xf32>
    %16 = arith.addf %15, %14 : vector<8x128xf32>
    %17 = arith.divf %15, %16 : vector<8x128xf32>
    %c0_12 = arith.constant 0 : index
    %c0_13 = arith.constant 0 : index
    %18 = vector.load %arg6[%c0_12, %c0_13] : memref<8x128xf32, #tpu.memory_space<vmem>>, vector<8x128xf32>
    tpu.vector_store %arg6[%c0_12, %c0_13], %17 {strides = array<i32>} : memref<8x128xf32, #tpu.memory_space<vmem>>, vector<8x128xf32>,
    return
  }
  func.func @transform_0(%arg0: i32) -> (i32, i32) {
    %c0_i32 = arith.constant 0 : i32
    %c0_i32_0 = arith.constant 0 : i32
    return %arg0, %c0_i32 : i32, i32
  }
  func.func @transform_1(%arg0: i32) -> (i32, i32) {
    %c0_i32 = arith.constant 0 : i32
    %c0_i32_0 = arith.constant 0 : i32
    %c0_i32_1 = arith.constant 0 : i32
    return %c0_i32, %c0_i32_0 : i32, i32
  }
  func.func @transform_2(%arg0: i32) -> (i32, i32) {
    %c0_i32 = arith.constant 0 : i32
    %c0_i32_0 = arith.constant 0 : i32
    %c0_i32_1 = arith.constant 0 : i32
    return %c0_i32, %c0_i32_0 : i32, i32
  }
  func.func @transform_3(%arg0: i32) -> (i32, i32) {
    %c0_i32 = arith.constant 0 : i32
    %c0_i32_0 = arith.constant 0 : i32
    %c0_i32_1 = arith.constant 0 : i32
    return %c0_i32, %c0_i32_0 : i32, i32
  }
  func.func @transform_4(%arg0: i32) -> (i32, i32) {
    %c0_i32 = arith.constant 0 : i32
    %c0_i32_0 = arith.constant 0 : i32
    %c0_i32_1 = arith.constant 0 : i32
    return %c0_i32, %c0_i32_0 : i32, i32
  }
  func.func @transform_5(%arg0: i32) -> (i32, i32) {
    %c0_i32 = arith.constant 0 : i32
    %c0_i32_0 = arith.constant 0 : i32
    return %arg0, %c0_i32 : i32, i32
  }
}

module attributes {stable_mosaic.version = 11 : i64} {
  func.func @_two_layer_kernel_fused(%arg0: i32, %arg1: memref<8x128xf32, #tpu.memory_space<vmem>>, %arg2: memref<128x128xf32, #tpu.memory_space<vmem>>, %arg3: memref<1x128xf32, #tpu.memory_space<vmem>>, %arg4: memref<128x128xf32, #tpu.memory_space<vmem>>, %arg5: memref<1x128xf32, #tpu.memory_space<vmem>>, %arg6: memref<8x128xf32, #tpu.memory_space<vmem>>) attributes {dimension_semantics = [#tpu.dimension_semantics<parallel>], iteration_bounds = array<i64: 1>, scalar_prefetch = 0 : i64, scratch_operands = 0 : i64, tpu.core_type = #tpu.core_type<tc>, window_params = [{transform_indices = @transform_0, window_bounds = array<i64: 8, 128>}, {pipeline_mode = #tpu.pipeline_mode<synchronous>, transform_indices = @transform_1, window_bounds = array<i64: 128, 128>}, {pipeline_mode = #tpu.pipeline_mode<synchronous>, transform_indices = @transform_2, window_bounds = array<i64: 1, 128>}, {pipeline_mode = #tpu.pipeline_mode<synchronous>, transform_indices = @transform_3, window_bounds = array<i64: 128, 128>}, {pipeline_mode = #tpu.pipeline_mode<synchronous>, transform_indices = @transform_4, window_bounds = array<i64: 1, 128>}, {transform_indices = @transform_5, window_bounds = array<i64: 8, 128>}]} {
    %c0 = arith.constant 0 : index
    %c0_0 = arith.constant 0 : index
    %0 = vector.load %arg1[%c0, %c0_0] : memref<8x128xf32, #tpu.memory_space<vmem>>, vector<8x128xf32>
    %c0_1 = arith.constant 0 : index
    %c0_2 = arith.constant 0 : index
    %1 = vector.load %arg2[%c0_1, %c0_2] : memref<128x128xf32, #tpu.memory_space<vmem>>, vector<128x128xf32>
    %cst = arith.constant dense<0.000000e+00> : vector<8x128xf32>
    %2 = tpu.matmul %0, %1, %cst {dimension_numbers = #tpu.dot_dimension_numbers<[1], [0], [0], [1], [0, 0, 1, 1], [], []>} : vector<8x128xf32>, vector<128x128xf32>, vector<8x128xf32> -> vector<8x128xf32>
    %c0_3 = arith.constant 0 : index
    %c0_4 = arith.constant 0 : index
    %3 = vector.load %arg3[%c0_3, %c0_4] : memref<1x128xf32, #tpu.memory_space<vmem>>, vector<1x128xf32>
    %4 = vector.broadcast %3 : vector<1x128xf32> to vector<8x128xf32>
    %5 = arith.addf %2, %4 : vector<8x128xf32>
    %cst_5 = arith.constant 0.000000e+00 : f32
    %6 = vector.broadcast %cst_5 : f32 to vector<8x128xf32>
    %7 = arith.maximumf %5, %6 : vector<8x128xf32>
    %c0_6 = arith.constant 0 : index
    %c0_7 = arith.constant 0 : index
    %8 = vector.load %arg4[%c0_6, %c0_7] : memref<128x128xf32, #tpu.memory_space<vmem>>, vector<128x128xf32>
    %cst_8 = arith.constant dense<0.000000e+00> : vector<8x128xf32>
    %9 = tpu.matmul %7, %8, %cst_8 {dimension_numbers = #tpu.dot_dimension_numbers<[1], [0], [0], [1], [0, 0, 1, 1], [], []>} : vector<8x128xf32>, vector<128x128xf32>, vector<8x128xf32> -> vector<8x128xf32>
    %c0_9 = arith.constant 0 : index
    %c0_10 = arith.constant 0 : index
    %10 = vector.load %arg5[%c0_9, %c0_10] : memref<1x128xf32, #tpu.memory_space<vmem>>, vector<1x128xf32>
    %11 = vector.broadcast %10 : vector<1x128xf32> to vector<8x128xf32>
    %12 = arith.addf %9, %11 : vector<8x128xf32>
    %13 = arith.negf %12 : vector<8x128xf32>
    %14 = math.exp %13 : vector<8x128xf32>
    %cst_11 = arith.constant 1.000000e+00 : f32
    %15 = vector.broadcast %cst_11 : f32 to vector<8x128xf32>
    %16 = arith.addf %15, %14 : vector<8x128xf32>
    %17 = arith.divf %15, %16 : vector<8x128xf32>
    %c0_12 = arith.constant 0 : index
    %c0_13 = arith.constant 0 : index
    %18 = vector.load %arg6[%c0_12, %c0_13] : memref<8x128xf32, #tpu.memory_space<vmem>>, vector<8x128xf32>
    tpu.vector_store %arg6[%c0_12, %c0_13], %17 {strides = array<i32>} : memref<8x128xf32, #tpu.memory_space<vmem>>, vector<8x128xf32>,
    return
  }
  func.func @transform_0(%arg0: i32) -> (i32, i32) {
    %c0_i32 = arith.constant 0 : i32
    %c0_i32_0 = arith.constant 0 : i32
    return %arg0, %c0_i32 : i32, i32
  }
  func.func @transform_1(%arg0: i32) -> (i32, i32) {
    %c0_i32 = arith.constant 0 : i32
    %c0_i32_0 = arith.constant 0 : i32
    %c0_i32_1 = arith.constant 0 : i32
    return %c0_i32, %c0_i32_0 : i32, i32
  }
  func.func @transform_2(%arg0: i32) -> (i32, i32) {
    %c0_i32 = arith.constant 0 : i32
    %c0_i32_0 = arith.constant 0 : i32
    %c0_i32_1 = arith.constant 0 : i32
    return %c0_i32, %c0_i32_0 : i32, i32
  }
  func.func @transform_3(%arg0: i32) -> (i32, i32) {
    %c0_i32 = arith.constant 0 : i32
    %c0_i32_0 = arith.constant 0 : i32
    %c0_i32_1 = arith.constant 0 : i32
    return %c0_i32, %c0_i32_0 : i32, i32
  }
  func.func @transform_4(%arg0: i32) -> (i32, i32) {
    %c0_i32 = arith.constant 0 : i32
    %c0_i32_0 = arith.constant 0 : i32
    %c0_i32_1 = arith.constant 0 : i32
    return %c0_i32, %c0_i32_0 : i32, i32
  }
  func.func @transform_5(%arg0: i32) -> (i32, i32) {
    %c0_i32 = arith.constant 0 : i32
    %c0_i32_0 = arith.constant 0 : i32
    return %arg0, %c0_i32 : i32, i32
  }
}

</mosaic_0001>

<bundles_post_ra>
// kernel: tpu_custom_call.1
= control target key start
LH: loop header
LB: loop body
LE: loop exit
PB: predicated region body
PF: predicated region fallthrough
CT: control target
= control target key end

     0   :  { %10 = vsyncpa [#allocation3], 0  ;;  %s355_s0 = inlined_call_operand.hbm [shape: f32[8,128], index: 0, kind: input, shape index: {}]   ;;  %s356_s1 = inlined_call_operand.hbm [shape: f32[128,128], index: 1, kind: input, shape index: {}]   ;;  %s357_s2 = inlined_call_operand.vmem [shape: f32[1,128], index: 2, kind: input, shape index: {}]   ;;  %s358_s3 = inlined_call_operand.hbm [shape: f32[128,128], index: 3, kind: input, shape index: {}]   ;;  %s359_s4 = inlined_call_operand.vmem [shape: f32[1,128], index: 4, kind: input, shape index: {}]   ;;  %s360_s5 = inlined_call_operand.hbm [shape: f32[8,128], index: 5, kind: output, shape index: {}]  }
   0x1   :  { %11 = vsyncpa [#allocation6], 0  ;;  %s28_s20 = sshll.u32 %s356_s1, 4  ;;  %s29_s20 = int_to_ptr.hbm [resolvable:$true] %s28_s20 }
   0x2   :  { %12 = vsyncpa [#allocation4], 0  ;;  %s301_s21 = smov [#allocation5]   ;;  %s18_s25 = sshll.u32 %s355_s0, 4  ;;  %s19_s25 = int_to_ptr.hbm [resolvable:$true] %s18_s25 }
   0x3   :  { %s30_s22 = sshll.u32 %s301_s21, 4  ;;  %s302_s26 = smov 128   ;;  %s31_s22 = int_to_ptr.vmem [resolvable:$true] %s30_s22 }
   0x4   :  { %s303_s27 = smov 8   ;;  %s304_s28 = smov [#allocation2]  }
   0x5   :  { %36 = dma.hbm_to_vmem [thread:$0]  %s29_s20, 2048, %s31_s22, [#allocation6], %s302_s26, %s302_s26, %s303_s27  }
   0x6   :  { %s20_s29 = sshll.u32 %s304_s28, 4  ;;  %s43_s7 = sshll.u32 %s358_s3, 4  ;;  %s21_s29 = int_to_ptr.vmem [resolvable:$true] %s20_s29  ;;  %s44_s7 = int_to_ptr.hbm [resolvable:$true] %s43_s7 }
   0x7   :  { %23 = dma.hbm_to_vmem [thread:$0]  %s19_s25, 128, %s21_s29, [#allocation3]  }
   0x8   :  { %s305_s1 = smov [#allocation7]  }
   0x9   :  { %s45_s8 = sshll.u32 %s305_s1, 4  ;;  %s46_s8 = int_to_ptr.vmem [resolvable:$true] %s45_s8 }
   0xa   :  { %51 = dma.hbm_to_vmem [thread:$0]  %s44_s7, 2048, %s46_s8, [#allocation6], %s302_s26, %s302_s26, %s303_s27  }
   0xb   :  { %295 = dma.done.wait [#allocation3], 128  }
   0xc   :  { %296 = vsyncadd [#allocation3], 4294967168 }
   0xd   :  { %297 = dma.done.wait [#allocation6], 4096  }
   0xe   :  { %298 = vsyncadd [#allocation6], 4294963200  ;;  %v82_v0 = vld [vmem:[#allocation5 + $0x78] sm:$0xff]  ;;  %v81_v1 = vld [vmem:[#allocation5 + $0x70] sm:$0xff] }
   0xf   :  { %87 = vmatpush.msra.mxu0 %v82_v0  ;;  %v80_v2 = vld [vmem:[#allocation5 + $0x68] sm:$0xff]  ;;  %v79_v3 = vld [vmem:[#allocation5 + $0x60] sm:$0xff]  ;;  %v123_v4 = vld [vmem:[#allocation7 + $0x78] sm:$0xff] }
  0x10   :  { %v78_v5 = vld [vmem:[#allocation5 + $0x58] sm:$0xff]  ;;  %128 = vmatpush.msra.mxu1 %v123_v4  ;;  %v122_v6 = vld [vmem:[#allocation7 + $0x70] sm:$0xff]  ;;  %v121_v7 = vld [vmem:[#allocation7 + $0x68] sm:$0xff] }
  0x11   :  { %88 = vmatpush.msra.mxu0 %v81_v1  ;;  %v77_v8 = vld [vmem:[#allocation5 + $0x50] sm:$0xff]  ;;  %v120_v9 = vld [vmem:[#allocation7 + $0x60] sm:$0xff]  ;;  %v76_v10 = vld [vmem:[#allocation5 + $0x48] sm:$0xff] }
  0x12   :  { %129 = vmatpush.msra.mxu1 %v122_v6  ;;  %v119_v11 = vld [vmem:[#allocation7 + $0x58] sm:$0xff]  ;;  %v75_v12 = vld [vmem:[#allocation5 + $0x40] sm:$0xff]  ;;  %v118_v13 = vld [vmem:[#allocation7 + $0x50] sm:$0xff] }
  0x13   :  { %89 = vmatpush.msra.mxu0 %v80_v2  ;;  %v74_v14 = vld [vmem:[#allocation5 + $0x38] sm:$0xff]  ;;  %v117_v15 = vld [vmem:[#allocation7 + $0x48] sm:$0xff]  ;;  %v73_v16 = vld [vmem:[#allocation5 + $0x30] sm:$0xff] }
  0x14   :  { %130 = vmatpush.msra.mxu1 %v121_v7  ;;  %v116_v17 = vld [vmem:[#allocation7 + $0x40] sm:$0xff]  ;;  %v72_v18 = vld [vmem:[#allocation5 + $0x28] sm:$0xff]  ;;  %v115_v19 = vld [vmem:[#allocation7 + $0x38] sm:$0xff] }
  0x15   :  { %90 = vmatpush.msra.mxu0 %v79_v3  ;;  %v71_v20 = vld [vmem:[#allocation5 + $0x20] sm:$0xff]  ;;  %v114_v21 = vld [vmem:[#allocation7 + $0x30] sm:$0xff]  ;;  %v70_v22 = vld [vmem:[#allocation5 + $0x18] sm:$0xff] }
  0x16   :  { %131 = vmatpush.msra.mxu1 %v120_v9  ;;  %v113_v23 = vld [vmem:[#allocation7 + $0x28] sm:$0xff]  ;;  %v69_v24 = vld [vmem:[#allocation5 + $0x10] sm:$0xff]  ;;  %v112_v25 = vld [vmem:[#allocation7 + $0x20] sm:$0xff] }
  0x17   :  { %91 = vmatpush.msra.mxu0 %v78_v5  ;;  %v68_v26 = vld [vmem:[#allocation5 + $0x8] sm:$0xff]  ;;  %v111_v27 = vld [vmem:[#allocation7 + $0x18] sm:$0xff]  ;;  %v67_v28 = vld [vmem:[#allocation5] sm:$0xff] }
  0x18   :  { %132 = vmatpush.msra.mxu1 %v119_v11  ;;  %v66_v29 = vld [vmem:[#allocation2] sm:$0xff]  ;;  %v110_v30 = vld [vmem:[#allocation7 + $0x10] sm:$0xff]  ;;  %v109_v31 = vld [vmem:[#allocation7 + $0x8] sm:$0xff] }
  0x19   :  { %92 = vmatpush.msra.mxu0 %v77_v8  ;;  %v108_v32 = vld [vmem:[#allocation7] sm:$0xff]  ;;  %v193_v33 = vld [vmem:[%s357_s2] ss:$0 sm:$0xff]  ;;  %s306_s2 = smov [#allocation8]  }
  0x1a   :  { %133 = vmatpush.msra.mxu1 %v118_v13  ;;  %v194_v37 = vld [vmem:[%s359_s4] ss:$0 sm:$0xff]  ;;  %s173_s11 = sshll.u32 %s306_s2, 4  ;;  %s175_s4 = sshll.u32 %s360_s5, 4  ;;  %s174_s11 = int_to_ptr.vmem [resolvable:$true] %s173_s11  ;;  %s176_s4 = int_to_ptr.hbm [resolvable:$true] %s175_s4 }
  0x1b   :  { %93 = vmatpush.msra.mxu0 %v76_v10 }
  0x1c   :  { %134 = vmatpush.msra.mxu1 %v117_v15 }
  0x1d   :  { %94 = vmatpush.msra.mxu0 %v75_v12 }
  0x1e   :  { %135 = vmatpush.msra.mxu1 %v116_v17 }
  0x1f   :  { %95 = vmatpush.msra.mxu0 %v74_v14 }
  0x20   :  { %136 = vmatpush.msra.mxu1 %v115_v19 }
  0x21   :  { %96 = vmatpush.msra.mxu0 %v73_v16 }
  0x22   :  { %137 = vmatpush.msra.mxu1 %v114_v21 }
  0x23   :  { %97 = vmatpush.msra.mxu0 %v72_v18 }
  0x24   :  { %138 = vmatpush.msra.mxu1 %v113_v23 }
  0x25   :  { %98 = vmatpush.msra.mxu0 %v71_v20 }
  0x26   :  { %139 = vmatpush.msra.mxu1 %v112_v25 }
  0x27   :  { %99 = vmatpush.msra.mxu0 %v70_v22 }
  0x28   :  { %140 = vmatpush.msra.mxu1 %v111_v27 }
  0x29   :  { %100 = vmatpush.msra.mxu0 %v69_v24 }
  0x2a   :  { %141 = vmatpush.msra.mxu1 %v110_v30 }
  0x2b   :  { %101 = vmatpush.msra.mxu0 %v68_v26 }
  0x2c   :  { %142 = vmatpush.msra.mxu1 %v109_v31 }
  0x2d   :  { %102 = vmatpush.msra.mxu0 %v67_v28 }
  0x2e   :  { %103 = vmatmul.f32.vlgmr.msra.gmra.mxu0 %v66_v29  ;;  %143 = vmatpush.msra.mxu1 %v108_v32 }
  0xab   :  { %v104_v34 = vpop.f32.mrf.mxu0 }
  0xac   :  { %v105_v35 = vadd.f32 %v193_v33, %v104_v34 }
  0xae   :  { %v107_v36 = vmax.f32 %v105_v35, 0.0 }
  0xb0   :  { %144 = vmatmul.f32.vlgmr.msra.gmra.mxu1 %v107_v36 }
 0x12d   :  { %v145_v38 = vpop.f32.mrf.mxu1 }
 0x12e   :  { %v146_v39 = vadd.f32 %v194_v37, %v145_v38 }
 0x130   :  { %v186_v40 = vmul.f32 -1.442695, %v146_v39 }
 0x132   :  { %195 = vpow2.f32 %v186_v40 }
 0x138   :  { %v196_v41 = vpop.eup %195 }
 0x139   :  { %v151_v42 = vadd.f32 1.0, %v196_v41 }
 0x13b   :  { %197 = vrcp.f32 %v151_v42  ;;  %v163_v46 = vand.u32 2147483648, %v151_v42  ;;  %v161_v48 = vand.u32 2147483647, %v151_v42  ;;  %vm157_vm1 = vweird.f32 %v151_v42 }
 0x13d   :  { %v164_v50 = vor.u32 1.1754944e-38, %v163_v46  ;;  %vm162_vm3 = vcmp.eq.f32.partialorder %v161_v48, 8.507059e+37 }
 0x141   :  { %v198_v43 = vpop.eup %197 }
 0x142   :  { %v153_v44 = vmul.f32 %v198_v43, %v151_v42  ;;  %vm158_vm0 = vweird.f32 %v198_v43 }
 0x143   :  { %vm159_vm2 = vmor %vm157_vm1, %vm158_vm0 }
 0x144   :  { %v154_v45 = vsub.f32 1.0, %v153_v44 }
 0x146   :  { %v155_v47 = vmul.f32 %v198_v43, %v154_v45 }
 0x148   :  { %v156_v49 = vadd.f32 %v198_v43, %v155_v47 }
 0x14a   :  { %v160_v51 = vsel %vm159_vm2, %v198_v43, %v156_v49 }
 0x14b   :  { %v165_v52 = vsel %vm162_vm3, %v164_v50, %v160_v51 }
 0x14c   :  { %167 = vst [vmem:[#allocation8] sm:$0xff] %v165_v52 }
 0x14d   :  { %178 = dma.vmem_to_hbm [thread:$0]  %s174_s11, 128, %s176_s4, [#allocation4]  }
 0x14e   :  { %299 = dma.done.wait [#allocation4], 128  }
 0x14f   :  { %300 = vsyncadd [#allocation4], 4294967168 }
 0x150   :  { %183 = vsyncpa [#allocation3], 1 }
 0x151   :  { %184 = vsyncpa [#allocation6], 1 }
 0x152   :  { %185 = vsyncpa [#allocation4], 1 }

// kernel: tpu_custom_call.1
= control target key start
LH: loop header
LB: loop body
LE: loop exit
PB: predicated region body
PF: predicated region fallthrough
CT: control target
= control target key end

     0   :  { %10 = vsyncpa [#allocation3], 0  ;;  %s355_s0 = inlined_call_operand.hbm [shape: f32[8,128], index: 0, kind: input, shape index: {}]   ;;  %s356_s1 = inlined_call_operand.hbm [shape: f32[128,128], index: 1, kind: input, shape index: {}]   ;;  %s357_s2 = inlined_call_operand.vmem [shape: f32[1,128], index: 2, kind: input, shape index: {}]   ;;  %s358_s3 = inlined_call_operand.hbm [shape: f32[128,128], index: 3, kind: input, shape index: {}]   ;;  %s359_s4 = inlined_call_operand.vmem [shape: f32[1,128], index: 4, kind: input, shape index: {}]   ;;  %s360_s5 = inlined_call_operand.hbm [shape: f32[8,128], index: 5, kind: output, shape index: {}]  }
   0x1   :  { %11 = vsyncpa [#allocation6], 0  ;;  %s28_s20 = sshll.u32 %s356_s1, 4  ;;  %s29_s20 = int_to_ptr.hbm [resolvable:$true] %s28_s20 }
   0x2   :  { %12 = vsyncpa [#allocation4], 0  ;;  %s301_s21 = smov [#allocation5]   ;;  %s18_s25 = sshll.u32 %s355_s0, 4  ;;  %s19_s25 = int_to_ptr.hbm [resolvable:$true] %s18_s25 }
   0x3   :  { %s30_s22 = sshll.u32 %s301_s21, 4  ;;  %s302_s26 = smov 128   ;;  %s31_s22 = int_to_ptr.vmem [resolvable:$true] %s30_s22 }
   0x4   :  { %s303_s27 = smov 8   ;;  %s304_s28 = smov [#allocation2]  }
   0x5   :  { %36 = dma.hbm_to_vmem [thread:$0]  %s29_s20, 2048, %s31_s22, [#allocation6], %s302_s26, %s302_s26, %s303_s27  }
   0x6   :  { %s20_s29 = sshll.u32 %s304_s28, 4  ;;  %s43_s7 = sshll.u32 %s358_s3, 4  ;;  %s21_s29 = int_to_ptr.vmem [resolvable:$true] %s20_s29  ;;  %s44_s7 = int_to_ptr.hbm [resolvable:$true] %s43_s7 }
   0x7   :  { %23 = dma.hbm_to_vmem [thread:$0]  %s19_s25, 128, %s21_s29, [#allocation3]  }
   0x8   :  { %s305_s1 = smov [#allocation7]  }
   0x9   :  { %s45_s8 = sshll.u32 %s305_s1, 4  ;;  %s46_s8 = int_to_ptr.vmem [resolvable:$true] %s45_s8 }
   0xa   :  { %51 = dma.hbm_to_vmem [thread:$0]  %s44_s7, 2048, %s46_s8, [#allocation6], %s302_s26, %s302_s26, %s303_s27  }
   0xb   :  { %295 = dma.done.wait [#allocation3], 128  }
   0xc   :  { %296 = vsyncadd [#allocation3], 4294967168 }
   0xd   :  { %297 = dma.done.wait [#allocation6], 4096  }
   0xe   :  { %298 = vsyncadd [#allocation6], 4294963200  ;;  %v82_v0 = vld [vmem:[#allocation5 + $0x78] sm:$0xff]  ;;  %v81_v1 = vld [vmem:[#allocation5 + $0x70] sm:$0xff] }
   0xf   :  { %87 = vmatpush.msra.mxu0 %v82_v0  ;;  %v80_v2 = vld [vmem:[#allocation5 + $0x68] sm:$0xff]  ;;  %v79_v3 = vld [vmem:[#allocation5 + $0x60] sm:$0xff]  ;;  %v123_v4 = vld [vmem:[#allocation7 + $0x78] sm:$0xff] }
  0x10   :  { %v78_v5 = vld [vmem:[#allocation5 + $0x58] sm:$0xff]  ;;  %128 = vmatpush.msra.mxu1 %v123_v4  ;;  %v122_v6 = vld [vmem:[#allocation7 + $0x70] sm:$0xff]  ;;  %v121_v7 = vld [vmem:[#allocation7 + $0x68] sm:$0xff] }
  0x11   :  { %88 = vmatpush.msra.mxu0 %v81_v1  ;;  %v77_v8 = vld [vmem:[#allocation5 + $0x50] sm:$0xff]  ;;  %v120_v9 = vld [vmem:[#allocation7 + $0x60] sm:$0xff]  ;;  %v76_v10 = vld [vmem:[#allocation5 + $0x48] sm:$0xff] }
  0x12   :  { %129 = vmatpush.msra.mxu1 %v122_v6  ;;  %v119_v11 = vld [vmem:[#allocation7 + $0x58] sm:$0xff]  ;;  %v75_v12 = vld [vmem:[#allocation5 + $0x40] sm:$0xff]  ;;  %v118_v13 = vld [vmem:[#allocation7 + $0x50] sm:$0xff] }
  0x13   :  { %89 = vmatpush.msra.mxu0 %v80_v2  ;;  %v74_v14 = vld [vmem:[#allocation5 + $0x38] sm:$0xff]  ;;  %v117_v15 = vld [vmem:[#allocation7 + $0x48] sm:$0xff]  ;;  %v73_v16 = vld [vmem:[#allocation5 + $0x30] sm:$0xff] }
  0x14   :  { %130 = vmatpush.msra.mxu1 %v121_v7  ;;  %v116_v17 = vld [vmem:[#allocation7 + $0x40] sm:$0xff]  ;;  %v72_v18 = vld [vmem:[#allocation5 + $0x28] sm:$0xff]  ;;  %v115_v19 = vld [vmem:[#allocation7 + $0x38] sm:$0xff] }
  0x15   :  { %90 = vmatpush.msra.mxu0 %v79_v3  ;;  %v71_v20 = vld [vmem:[#allocation5 + $0x20] sm:$0xff]  ;;  %v114_v21 = vld [vmem:[#allocation7 + $0x30] sm:$0xff]  ;;  %v70_v22 = vld [vmem:[#allocation5 + $0x18] sm:$0xff] }
  0x16   :  { %131 = vmatpush.msra.mxu1 %v120_v9  ;;  %v113_v23 = vld [vmem:[#allocation7 + $0x28] sm:$0xff]  ;;  %v69_v24 = vld [vmem:[#allocation5 + $0x10] sm:$0xff]  ;;  %v112_v25 = vld [vmem:[#allocation7 + $0x20] sm:$0xff] }
  0x17   :  { %91 = vmatpush.msra.mxu0 %v78_v5  ;;  %v68_v26 = vld [vmem:[#allocation5 + $0x8] sm:$0xff]  ;;  %v111_v27 = vld [vmem:[#allocation7 + $0x18] sm:$0xff]  ;;  %v67_v28 = vld [vmem:[#allocation5] sm:$0xff] }
  0x18   :  { %132 = vmatpush.msra.mxu1 %v119_v11  ;;  %v66_v29 = vld [vmem:[#allocation2] sm:$0xff]  ;;  %v110_v30 = vld [vmem:[#allocation7 + $0x10] sm:$0xff]  ;;  %v109_v31 = vld [vmem:[#allocation7 + $0x8] sm:$0xff] }
  0x19   :  { %92 = vmatpush.msra.mxu0 %v77_v8  ;;  %v108_v32 = vld [vmem:[#allocation7] sm:$0xff]  ;;  %v193_v33 = vld [vmem:[%s357_s2] ss:$0 sm:$0xff]  ;;  %s306_s2 = smov [#allocation8]  }
  0x1a   :  { %133 = vmatpush.msra.mxu1 %v118_v13  ;;  %v194_v37 = vld [vmem:[%s359_s4] ss:$0 sm:$0xff]  ;;  %s173_s11 = sshll.u32 %s306_s2, 4  ;;  %s175_s4 = sshll.u32 %s360_s5, 4  ;;  %s174_s11 = int_to_ptr.vmem [resolvable:$true] %s173_s11  ;;  %s176_s4 = int_to_ptr.hbm [resolvable:$true] %s175_s4 }
  0x1b   :  { %93 = vmatpush.msra.mxu0 %v76_v10 }
  0x1c   :  { %134 = vmatpush.msra.mxu1 %v117_v15 }
  0x1d   :  { %94 = vmatpush.msra.mxu0 %v75_v12 }
  0x1e   :  { %135 = vmatpush.msra.mxu1 %v116_v17 }
  0x1f   :  { %95 = vmatpush.msra.mxu0 %v74_v14 }
  0x20   :  { %136 = vmatpush.msra.mxu1 %v115_v19 }
  0x21   :  { %96 = vmatpush.msra.mxu0 %v73_v16 }
  0x22   :  { %137 = vmatpush.msra.mxu1 %v114_v21 }
  0x23   :  { %97 = vmatpush.msra.mxu0 %v72_v18 }
  0x24   :  { %138 = vmatpush.msra.mxu1 %v113_v23 }
  0x25   :  { %98 = vmatpush.msra.mxu0 %v71_v20 }
  0x26   :  { %139 = vmatpush.msra.mxu1 %v112_v25 }
  0x27   :  { %99 = vmatpush.msra.mxu0 %v70_v22 }
  0x28   :  { %140 = vmatpush.msra.mxu1 %v111_v27 }
  0x29   :  { %100 = vmatpush.msra.mxu0 %v69_v24 }
  0x2a   :  { %141 = vmatpush.msra.mxu1 %v110_v30 }
  0x2b   :  { %101 = vmatpush.msra.mxu0 %v68_v26 }
  0x2c   :  { %142 = vmatpush.msra.mxu1 %v109_v31 }
  0x2d   :  { %102 = vmatpush.msra.mxu0 %v67_v28 }
  0x2e   :  { %103 = vmatmul.f32.vlgmr.msra.gmra.mxu0 %v66_v29  ;;  %143 = vmatpush.msra.mxu1 %v108_v32 }
  0xab   :  { %v104_v34 = vpop.f32.mrf.mxu0 }
  0xac   :  { %v105_v35 = vadd.f32 %v193_v33, %v104_v34 }
  0xae   :  { %v107_v36 = vmax.f32 %v105_v35, 0.0 }
  0xb0   :  { %144 = vmatmul.f32.vlgmr.msra.gmra.mxu1 %v107_v36 }
 0x12d   :  { %v145_v38 = vpop.f32.mrf.mxu1 }
 0x12e   :  { %v146_v39 = vadd.f32 %v194_v37, %v145_v38 }
 0x130   :  { %v186_v40 = vmul.f32 -1.442695, %v146_v39 }
 0x132   :  { %195 = vpow2.f32 %v186_v40 }
 0x138   :  { %v196_v41 = vpop.eup %195 }
 0x139   :  { %v151_v42 = vadd.f32 1.0, %v196_v41 }
 0x13b   :  { %197 = vrcp.f32 %v151_v42  ;;  %v163_v46 = vand.u32 2147483648, %v151_v42  ;;  %v161_v48 = vand.u32 2147483647, %v151_v42  ;;  %vm157_vm1 = vweird.f32 %v151_v42 }
 0x13d   :  { %v164_v50 = vor.u32 1.1754944e-38, %v163_v46  ;;  %vm162_vm3 = vcmp.eq.f32.partialorder %v161_v48, 8.507059e+37 }
 0x141   :  { %v198_v43 = vpop.eup %197 }
 0x142   :  { %v153_v44 = vmul.f32 %v198_v43, %v151_v42  ;;  %vm158_vm0 = vweird.f32 %v198_v43 }
 0x143   :  { %vm159_vm2 = vmor %vm157_vm1, %vm158_vm0 }
 0x144   :  { %v154_v45 = vsub.f32 1.0, %v153_v44 }
 0x146   :  { %v155_v47 = vmul.f32 %v198_v43, %v154_v45 }
 0x148   :  { %v156_v49 = vadd.f32 %v198_v43, %v155_v47 }
 0x14a   :  { %v160_v51 = vsel %vm159_vm2, %v198_v43, %v156_v49 }
 0x14b   :  { %v165_v52 = vsel %vm162_vm3, %v164_v50, %v160_v51 }
 0x14c   :  { %167 = vst [vmem:[#allocation8] sm:$0xff] %v165_v52 }
 0x14d   :  { %178 = dma.vmem_to_hbm [thread:$0]  %s174_s11, 128, %s176_s4, [#allocation4]  }
 0x14e   :  { %299 = dma.done.wait [#allocation4], 128  }
 0x14f   :  { %300 = vsyncadd [#allocation4], 4294967168 }
 0x150   :  { %183 = vsyncpa [#allocation3], 1 }
 0x151   :  { %184 = vsyncpa [#allocation6], 1 }
 0x152   :  { %185 = vsyncpa [#allocation4], 1 }

</bundles_post_ra>
